<compile_context>
chip_gen: v7x
topology: tpu7x:2x2x1
jax: 0.10.0
libtpu: 0.0.40
codegen_flags: <defaults>
</compile_context>

<pallas_src>
import math
from functools import partial

import numpy as np
import jax
import jax.numpy as jnp
from jax.experimental import pallas as pl
from jax.experimental.pallas import tpu as pltpu

_LANE_CHOICES = (1024, 512, 256, 128)
_TARGET_BLOCK_BYTES = 2 * 1024 * 1024   # ~2 MiB f32 tiles
_MIN_BLOCK_BYTES = 256 * 1024           # only split into >=4 blocks if each >=256 KiB


def _cdiv(a, b):
    return -(-a // b)


def _round_up(a, m):
    return _cdiv(a, m) * m


def _layout(n):
    """Pick a lane-dense (rows, lane_w) view of the flat activation plus a
    row-block size.  Copy-free whenever possible.  Returns
    (lane_w, rows, block_rows, padded_n); padded_n == n on the copy-free path."""
    lane_w = None
    for w in _LANE_CHOICES:
        if n % w == 0:
            lane_w, rows = w, n // w
            break
    if lane_w is None:                          # ragged tail: pad flat to 128 lanes
        lane_w, rows = 128, _cdiv(n, 128)

    row_bytes = lane_w * 4
    slab_bytes = rows * row_bytes
    if rows <= 8 or slab_bytes < 4 * _MIN_BLOCK_BYTES:
        return lane_w, rows, rows, rows * lane_w        # single full-extent block

    target_rows = max(8, _TARGET_BLOCK_BYTES // row_bytes)
    min_rows = max(8, _MIN_BLOCK_BYTES // row_bytes)

    # Clean split: block_rows divides rows, multiple of 8 (f32 tiling), zero padding.
    cands = [d for d in range(8, rows // 2 + 1, 8) if rows % d == 0]
    if cands:
        def score(d):
            nb = rows // d
            if nb >= 4 and d >= min_rows:
                tier = 0          # >=2 grid steps per v7x TC, decent DMA size
            elif d >= min_rows:
                tier = 1
            else:
                tier = 2
            # prefer multiples of 32 so membrane_lower can be int8-tiled
            return (tier, 0 if d % 32 == 0 else 1, abs(d - target_rows))
        block_rows = min(cands, key=score)
        return lane_w, rows, block_rows, rows * lane_w

    # No clean split (rare): pad rows so >=4 roughly target-sized blocks exist.
    block_rows = max(8, min(target_rows, _round_up(_cdiv(rows, 4), 8)))
    padded_rows = _round_up(rows, block_rows)
    return lane_w, padded_rows, block_rows, padded_rows * lane_w


def _mp_kernel(*refs, v_threshold, inv_threshold, is_first, write_ml, apply_ml):
    """One phase-specialized MPLayer timestep on a (block_rows, lane_w) tile."""
    it = iter(refs)
    x_ref = next(it)
    v_ref = None if is_first else next(it)
    ml_in_ref = next(it) if apply_ml else None
    out_ref = next(it)
    v_out_ref = next(it)
    ml_out_ref = next(it) if write_ml else None

    x = x_ref[...].astype(jnp.float32)          # bf16 inputs upcast in the VPU
    if inv_threshold is not None:
        xs = x * np.float32(inv_threshold)      # exact for power-of-two thresholds
    else:
        xs = x / np.float32(v_threshold)

    if is_first:
        # t == 0: reset + charge 0.5 (0.5 < 1 -> no spike), then charge x
        v = xs + np.float32(0.5)
    else:
        v = v_ref[...] + xs

    fire = v >= np.float32(1.0)
    out = jnp.where(fire, np.float32(v_threshold), np.float32(0.0))  # spike * vth
    v = jnp.where(fire, v - np.float32(1.0), v)                      # soft reset

    if write_ml:
        # record membrane_lower from post-spike v, then reset + charge 0.5
        ml_out_ref[...] = (v > np.float32(0.001)).astype(ml_out_ref.dtype)
        v = jnp.full_like(v, np.float32(0.5))
    if apply_ml:
        out = jnp.where(ml_in_ref[...] != 0, out, np.float32(0.0))

    out_ref[...] = out.astype(out_ref.dtype)
    v_out_ref[...] = v


def _build_step(orig_shape, x_dtype, layout, v_threshold,
                is_first, write_ml, apply_ml, ml_dtype):
    lane_w, rows, block_rows, padded_n = layout
    n = math.prod(int(d) for d in orig_shape)
    shape2d = (rows, lane_w)
    grid = (rows // block_rows,)
    blk = pl.BlockSpec((block_rows, lane_w), lambda i: (i, 0))

    thr = float(v_threshold)
    mant, _ = math.frexp(thr)
    inv_thr = (1.0 / thr) if mant == 0.5 else None   # exact only for powers of two

    out_dtype = x_dtype if jnp.issubdtype(x_dtype, jnp.floating) else jnp.float32

    in_specs = [blk] + ([] if is_first else [blk]) + ([blk] if apply_ml else [])
    out_shapes = [jax.ShapeDtypeStruct(shape2d, out_dtype),
                  jax.ShapeDtypeStruct(shape2d, jnp.float32)]
    if write_ml:
        out_shapes.append(jax.ShapeDtypeStruct(shape2d, ml_dtype))
    out_specs = tuple([blk] * len(out_shapes))

    kernel = partial(_mp_kernel, v_threshold=thr, inv_threshold=inv_thr,
                     is_first=is_first, write_ml=write_ml, apply_ml=apply_ml)

    call = pl.pallas_call(
        kernel,
        out_shape=tuple(out_shapes),
        grid=grid,
        in_specs=in_specs,
        out_specs=out_specs,
        # membrane state updated in place (v_in -> v_out)
        input_output_aliases=({} if is_first else {1: 1}),
        compiler_params=pltpu.CompilerParams(
            dimension_semantics=("parallel",),
            vmem_limit_bytes=32 * 1024 * 1024),
    )

    def _body(x, *state):
        xf = x.reshape(-1)                       # no dtype cast here: kernel upcasts
        if padded_n != n:                        # ragged fallback only
            xf = jnp.pad(xf, (0, padded_n - n))
        outs = call(xf.reshape(shape2d), *state)
        out2d = outs[0]
        if padded_n != n:
            out = out2d.reshape(-1)[:n].reshape(orig_shape)
        else:
            out = out2d.reshape(orig_shape)      # pure metadata reshape, copy-free
        return (out,) + tuple(outs[1:])

    # explicit arities (keeps donate_argnums unambiguous)
    if is_first:
        def step_fn(x):
            return _body(x)
        donate = ()
    elif apply_ml:
        def step_fn(x, v, ml):
            return _body(x, v, ml)
        donate = (1,)
    else:
        def step_fn(x, v):
            return _body(x, v)
        donate = (1,)

    return jax.jit(step_fn, donate_argnums=donate)


class MPLayerPallas:
    """Stateful wrapper mirroring spikenet.modules.MPLayer (per-step forward)."""

    def __init__(self, v_threshold, presim_len, sim_len):
        assert int(presim_len) >= 1 and int(sim_len) >= 1
        self.v_threshold = float(v_threshold)
        self.presim_len = int(presim_len)
        self.sim_len = int(sim_len)
        self.t = 0                  # host-side step counter (phase selection)
        self._v = None              # membrane potential, (rows, lane_w) f32
        self._ml = None             # membrane_lower mask, (rows, lane_w) int8/f32
        self._shape = None
        self._dtype = None
        self._layout_info = None
        self._ml_dtype = None
        self._steps = {}

    def __call__(self, x):
        orig_shape = tuple(int(d) for d in x.shape)
        x_dtype = np.dtype(x.dtype)
        if (self._shape, self._dtype) != (orig_shape, x_dtype):
            # shape/dtype change restarts the simulation (state + step counter)
            n = math.prod(orig_shape)
            self._shape, self._dtype = orig_shape, x_dtype
            self._layout_info = _layout(n)
            lane_w, rows, block_rows, _ = self._layout_info
            self._ml_dtype = (jnp.int8
                              if (block_rows == rows or block_rows % 32 == 0)
                              else jnp.float32)
            self._v, self._ml, self.t = None, None, 0

        t_new = self.t + 1
        is_first = (self.t == 0)
        write_ml = (t_new == self.presim_len)
        apply_ml = (t_new > self.presim_len)

        key = (self._shape, self._dtype, is_first, write_ml, apply_ml)
        step = self._steps.get(key)
        if step is None:
            step = _build_step(orig_shape, self._dtype, self._layout_info,
                               self.v_threshold, is_first, write_ml, apply_ml,
                               self._ml_dtype)
            self._steps[key] = step

        if is_first:
            res = step(x)
        elif apply_ml:
            res = step(x, self._v, self._ml)
        else:
            res = step(x, self._v)

        out = res[0]
        self._v = res[1]
        if write_ml:
            self._ml = res[2]
        self.t = 0 if t_new == self.presim_len + self.sim_len else t_new
        return out


class MPLayerRef:
    """Pure numpy reference matching the PyTorch module exactly."""

    def __init__(self, v_threshold, presim_len, sim_len):
        self.v_threshold = float(v_threshold)
        self.presim_len = int(presim_len)
        self.sim_len = int(sim_len)
        self.t = 0
        self.v = 0.0
        self.ml = None

    def _if_node(self, x):
        self.v = self.v + x
        spike = (self.v >= 1.0).astype(x.dtype)
        self.v = self.v - spike
        return spike

    def __call__(self, x):
        if self.t == 0:
            self.v = 0.0
            self._if_node(np.ones_like(x) * np.float32(0.5))
        output = self._if_node((x / np.float32(self.v_threshold)).astype(np.float32))
        self.t += 1
        if self.t == self.presim_len:
            self.ml = np.where(self.v > 0.001,
                               np.ones_like(output), np.zeros_like(output))
            self.v = 0.0
            self._if_node(np.ones_like(x) * np.float32(0.5))
        if self.t > self.presim_len:
            output = output * self.ml
        if self.t == self.presim_len + self.sim_len:
            self.t = 0
        return output * np.float32(self.v_threshold)


def _run_case(x_shape, v_threshold, presim_len, sim_len, n_steps, key):
    layer = MPLayerPallas(v_threshold, presim_len, sim_len)
    ref = MPLayerRef(v_threshold, presim_len, sim_len)
    last = None
    for _ in range(n_steps):
        key, sub = jax.random.split(key)
        x = jax.random.uniform(sub, x_shape, dtype=jnp.float32,
                               minval=0.0, maxval=2.0)
        out = layer(x)
        out = jax.block_until_ready(out)
        out_ref = ref(np.asarray(x, dtype=np.float32))
        np.testing.assert_allclose(np.asarray(out), out_ref, rtol=0, atol=1e-6)
        last = out
    return key, last


if __name__ == "__main__":
    key = jax.random.PRNGKey(0)

    # Case A: small NCHW input, copy-free single-block path, all phases + t wrap.
    key, out_a = _run_case((2, 4, 16, 16), 2.0, 3, 4, 3 + 4 + 2, key)

    # Case B: ragged input (n % 128 != 0) exercising the padded fallback path.
    key, out_b = _run_case((2, 3, 15, 17), 2.0, 2, 3, 2 + 3 + 1, key)

    # Case C: larger input exercising the multi-block (grid > 1) path with
    # int8 membrane_lower and 4 row blocks.
    key, out_c = _run_case((8, 16, 64, 64), 2.0, 2, 2, 2 + 2, key)

    jax.block_until_ready((out_a, out_b, out_c))
    print("KERNEL_OK")
</pallas_src>

<mosaic_0001>
module attributes {stable_mosaic.version = 11 : i64} {
  func.func @_mp_kernel(%arg0: i32, %arg1: memref<2x1024xf32, #tpu.memory_space<vmem>>, %arg2: memref<2x1024xf32, #tpu.memory_space<vmem>>, %arg3: memref<2x1024xf32, #tpu.memory_space<vmem>>) attributes {dimension_semantics = [#tpu.dimension_semantics<parallel>], iteration_bounds = array<i64: 1>, scalar_prefetch = 0 : i64, scratch_operands = 0 : i64, tpu.core_type = #tpu.core_type<tc>, window_params = [{transform_indices = @transform_0, window_bounds = array<i64: 2, 1024>}, {transform_indices = @transform_1, window_bounds = array<i64: 2, 1024>}, {transform_indices = @transform_2, window_bounds = array<i64: 2, 1024>}]} {
    %c0 = arith.constant 0 : index
    %c0_0 = arith.constant 0 : index
    %0 = vector.load %arg1[%c0, %c0_0] : memref<2x1024xf32, #tpu.memory_space<vmem>>, vector<2x1024xf32>
    %cst = arith.constant 5.000000e-01 : f32
    %1 = vector.broadcast %cst : f32 to vector<2x1024xf32>
    %2 = arith.mulf %0, %1 : vector<2x1024xf32>
    %cst_1 = arith.constant 5.000000e-01 : f32
    %3 = vector.broadcast %cst_1 : f32 to vector<2x1024xf32>
    %4 = arith.addf %2, %3 : vector<2x1024xf32>
    %cst_2 = arith.constant 1.000000e+00 : f32
    %5 = vector.broadcast %cst_2 : f32 to vector<2x1024xf32>
    %6 = arith.cmpf oge, %4, %5 : vector<2x1024xf32>
    %cst_3 = arith.constant 2.000000e+00 : f32
    %cst_4 = arith.constant 0.000000e+00 : f32
    %7 = vector.broadcast %cst_3 : f32 to vector<2x1024xf32>
    %8 = vector.broadcast %cst_4 : f32 to vector<2x1024xf32>
    %9 = arith.select %6, %7, %8 : vector<2x1024xi1>, vector<2x1024xf32>
    %cst_5 = arith.constant 1.000000e+00 : f32
    %10 = vector.broadcast %cst_5 : f32 to vector<2x1024xf32>
    %11 = arith.subf %4, %10 : vector<2x1024xf32>
    %12 = arith.select %6, %11, %4 : vector<2x1024xi1>, vector<2x1024xf32>
    %c0_6 = arith.constant 0 : index
    %c0_7 = arith.constant 0 : index
    %13 = vector.load %arg2[%c0_6, %c0_7] : memref<2x1024xf32, #tpu.memory_space<vmem>>, vector<2x1024xf32>
    tpu.vector_store %arg2[%c0_6, %c0_7], %9 {strides = array<i32>} : memref<2x1024xf32, #tpu.memory_space<vmem>>, vector<2x1024xf32>,
    %c0_8 = arith.constant 0 : index
    %c0_9 = arith.constant 0 : index
    %14 = vector.load %arg3[%c0_8, %c0_9] : memref<2x1024xf32, #tpu.memory_space<vmem>>, vector<2x1024xf32>
    tpu.vector_store %arg3[%c0_8, %c0_9], %12 {strides = array<i32>} : memref<2x1024xf32, #tpu.memory_space<vmem>>, vector<2x1024xf32>,
    return
  }
  func.func @transform_0(%arg0: i32) -> (i32, i32) {
    %c0_i32 = arith.constant 0 : i32
    %c0_i32_0 = arith.constant 0 : i32
    return %arg0, %c0_i32 : i32, i32
  }
  func.func @transform_1(%arg0: i32) -> (i32, i32) {
    %c0_i32 = arith.constant 0 : i32
    %c0_i32_0 = arith.constant 0 : i32
    return %arg0, %c0_i32 : i32, i32
  }
  func.func @transform_2(%arg0: i32) -> (i32, i32) {
    %c0_i32 = arith.constant 0 : i32
    %c0_i32_0 = arith.constant 0 : i32
    return %arg0, %c0_i32 : i32, i32
  }
}

</mosaic_0001>

<bundles_post_ra>
// kernel: step_fn.1
= control target key start
LH: loop header
LB: loop body
LE: loop exit
PB: predicated region body
PF: predicated region fallthrough
CT: control target
= control target key end

     0   :  { %s116_s0 = inlined_call_operand.vmem [shape: f32[2,1024], index: 0, kind: input, shape index: {}]   ;;  %s117_s1 = inlined_call_operand.vmem [shape: f32[2,1024], index: 1, kind: output, shape index: {0}]   ;;  %s118_s2 = inlined_call_operand.hbm [shape: f32[2,1024], index: 2, kind: output, shape index: {1}]  }
   0x1   :  { %v11_v0 = vld [vmem:[%s116_s0] sm:$0xff]  ;;  %v12_v1 = vld [vmem:[%s116_s0 + $0x8] sm:$0xff] }
   0x2   :  { %8 = vsyncpa [#allocation3], 0  ;;  %v13_v2 = vmul.f32 0.5, %v11_v0  ;;  %v14_v3 = vmul.f32 0.5, %v12_v1  ;;  %s75_s13 = smov [#allocation2]   ;;  %v76_v8 = vmov 0.0  }
   0x3   :  { %s37_s14 = sshll.u32 %s75_s13, 4  ;;  %s38_s14 = int_to_ptr.vmem [resolvable:$true] %s37_s14 }
   0x4   :  { %v15_v4 = vadd.f32 0.5, %v13_v2  ;;  %v16_v5 = vadd.f32 0.5, %v14_v3  ;;  %s51_s18 = scalar_lea.vmem %s38_s14, 256  ;;  %p56_p1 = scmp.lt.s32.totalorder %s38_s14, %s38_s14 }
   0x5   :  { %p52_p0 = scmp.ne.s32.totalorder %s38_s14, %s51_s18  ;;  %p57_p2 = scmp.lt.s32.totalorder %s51_s18, %s51_s18 }
   0x6   :  { %vm17_vm0 = vcmp.ge.f32.partialorder %v15_v4, 1.0  ;;  %v47_v6 = vadd.f32 -1.0, %v15_v4  ;;  %vm18_vm1 = vcmp.ge.f32.partialorder %v16_v5, 1.0  ;;  %v48_v7 = vadd.f32 -1.0, %v16_v5 }
   0x7   :  { %v19_v9 = vsel %vm17_vm0, 2.0, %v76_v8  ;;  %v20_v10 = vsel %vm18_vm1, 2.0, %v76_v8  ;;  %p58_p3 = por %p57_p2, %p56_p1 }
   0x8   :  { %v23_v11 = vsel %vm17_vm0, %v47_v6, %v15_v4  ;;  %v24_v12 = vsel %vm18_vm1, %v48_v7, %v16_v5  ;;  %25 = vst [vmem:[%s117_s1] sm:$0xff] %v19_v9  ;;  %26 = vst [vmem:[%s117_s1 + $0x8] sm:$0xff] %v20_v10 }
   0x9   :  { %27 = vst [vmem:[#allocation2] sm:$0xff] %v23_v11  ;;  %28 = vst [vmem:[#allocation2 + $0x8] sm:$0xff] %v24_v12  ;;  %p59_p4 = pnand %p58_p3, %p52_p0 }
   0xb   :  { %62 = shalt.err (!%p59_p4)
}
   0xc   :  { %s63_s21 = scalar_lea.hbm %s118_s2, 256 }
   0xd   :  { %p64_p5 = scmp.ne.s32.totalorder %s118_s2, %s63_s21  ;;  %p67_p6 = scmp.lt.u32.totalorder %s63_s21, %s118_s2 }
   0xf   :  { %p69_p7 = pnand %p67_p6, %p64_p5 }
  0x11   :  { %72 = shalt.err (!%p69_p7)
}
  0x12   :  { %40 = dma.vmem_to_hbm [thread:$0]  %s38_s14, 256, %s118_s2, [#allocation3]  }
  0x13   :  { %73 = dma.done.wait [#allocation3], 256  }
  0x14   :  { %74 = vsyncadd [#allocation3], 4294967040 }
  0x15   :  { %46 = vsyncpa [#allocation3], 1 }

</bundles_post_ra>
